<compile_context>
chip_gen: v6e
topology: v6e:2x2x1
jax: 0.10.0
libtpu: 0.0.40
codegen_flags: <defaults>
</compile_context>

<pallas_src>
import functools

import numpy as np
import jax
import jax.numpy as jnp
from jax.experimental import pallas as pl
from jax.experimental.pallas import tpu as pltpu


def _pick_tile_bc(bc, cols, target_bytes=1 << 20):
    """Largest row tile that keeps the input block <= target_bytes while satisfying
    the TPU (8, 128) block rule: a multiple of 8 rows, or the full axis."""
    if bc % 8 != 0:
        return bc                      # single block: block dims == full array dims
    divisors = [d for d in range(8, bc + 1, 8) if bc % d == 0]
    fitting = [d for d in divisors if d * cols * 4 <= target_bytes]
    return max(fitting) if fitting else min(divisors)


def _awgn_channel_kernel(seed_ref, scale_ref, x_ref, out_ref, *, sigma):
    """out = x * scale + AWGN.  Row layout: [ real plane | imag plane ] along lanes."""
    rows, cols = x_ref.shape
    half = cols // 2
    i = pl.program_id(0)
    scale = scale_ref[0]

    # ---- counter-based PRNG: one 32-bit draw per complex sample -------------------
    row_ids = jax.lax.broadcasted_iota(jnp.int32, (rows, half), 0)
    col_ids = jax.lax.broadcasted_iota(jnp.int32, (rows, half), 1)
    # Global complex-sample index: unique across grid steps (decorrelated tiles) and
    # independent of the tiling itself (grid-invariant sampling).
    # TODO(synk): widen the counter beyond 32 bits if B*C*H*W/2 ever exceeds 2**31.
    gidx = (i * rows + row_ids) * half + col_ids
    u = gidx.astype(jnp.uint32) * jnp.uint32(0x9E3779B1)
    u = u + seed_ref[0].astype(jnp.uint32)
    # murmur3 fmix32 finalizer (wrapping uint32 arithmetic, logical shifts).
    u = u ^ (u >> 16)
    u = u * jnp.uint32(0x85EBCA6B)
    u = u ^ (u >> 13)
    u = u * jnp.uint32(0xC2B2AE35)
    u = u ^ (u >> 16)

    hi = (u >> 16).astype(jnp.int32)                 # 16 high bits
    lo = (u & jnp.uint32(0xFFFF)).astype(jnp.int32)  # 16 low bits
    u1 = (hi.astype(jnp.float32) + 0.5) * (1.0 / 65536.0)   # (0, 1): never 0 -> log safe
    u2 = lo.astype(jnp.float32) * (1.0 / 65536.0)            # [0, 1)

    # ---- Box-Muller: one (u1, u2) pair -> independent N(0, sigma) real & imag -----
    r_s = sigma * jnp.sqrt(-2.0 * jnp.log(u1))       # sigma folded in once
    theta = (2.0 * np.pi) * u2
    noise_re = r_s * jnp.cos(theta)
    noise_im = r_s * jnp.sin(theta)

    # ---- normalize + add noise -----------------------------------------------------
    xs = x_ref[...] * scale
    out_ref[:, :half] = xs[:, :half] + noise_re
    out_ref[:, half:] = xs[:, half:] + noise_im


def channel_forward(x, chan_param, seed=0, tile_bc=None):
    """AWGN Channel.forward.  x: (B, C, H, W) float, chan_param: SNR in dB.

    Returns (channel_output complex64 (B, C, H//2, W), pwr scalar f32, h ones)."""
    B, C, H, W = x.shape
    assert H % 2 == 0, "H must be even (split into real/imag halves)"
    BC, cols = B * C, H * W

    x2 = jnp.asarray(x, jnp.float32).reshape(BC, cols)   # lane-dense, free reshape

    # ---- pass 1: global power (cheap HBM-bound reduction; scalar feeds the kernel) -
    pwr = jnp.mean(x2 * x2) * 2.0
    scale = jax.lax.rsqrt(pwr)                            # 1 / sqrt(pwr)

    # ---- pass 2: gridded normalize + complex AWGN Pallas kernel --------------------
    if tile_bc is None:
        tile_bc = _pick_tile_bc(BC, cols)
    assert BC % tile_bc == 0 and (tile_bc % 8 == 0 or tile_bc == BC)
    grid = BC // tile_bc

    sigma = float(np.sqrt(1.0 / (2.0 * 10.0 ** (float(chan_param) / 10.0))))
    seed_arr = jnp.asarray([seed], dtype=jnp.int32)
    scale_arr = jnp.reshape(scale, (1,)).astype(jnp.float32)

    block = pl.BlockSpec((tile_bc, cols), lambda i: (i, 0))
    smem = pl.BlockSpec(memory_space=pltpu.MemorySpace.SMEM)

    y = pl.pallas_call(
        functools.partial(_awgn_channel_kernel, sigma=sigma),
        out_shape=jax.ShapeDtypeStruct((BC, cols), jnp.float32),
        grid=(grid,),
        in_specs=[smem, smem, block],
        out_specs=block,
        compiler_params=pltpu.CompilerParams(
            dimension_semantics=("parallel",)),   # v7x: shard BC tiles over both TCs
    )(seed_arr, scale_arr, x2)

    # ---- package to the module's return contract -----------------------------------
    # (A planar consumer could skip this combine and the ones materialization; they
    #  are kept only for fidelity with the PyTorch module's return values.)
    y4 = y.reshape(B, C, H, W)
    channel_output = jax.lax.complex(y4[:, :, :H // 2, :], y4[:, :, H // 2:, :])
    h = jnp.ones(channel_output.shape, dtype=jnp.float32)
    return channel_output, pwr, h


if __name__ == "__main__":
    key = jax.random.PRNGKey(0)
    B, C, H, W = 2, 8, 16, 16
    x = jax.random.normal(key, (B, C, H, W), dtype=jnp.float32)
    chan_param = 10.0  # SNR in dB

    # tile_bc=8 -> grid of 2, exercising the gridded path (per-tile decorrelated noise).
    out, pwr, h = channel_forward(x, chan_param, seed=0, tile_bc=8)
    jax.block_until_ready((out, pwr, h))

    assert out.shape == (B, C, H // 2, W) and out.dtype == jnp.complex64
    assert h.shape == out.shape and h.dtype == jnp.float32

    # power matches mean(x^2) * 2
    pwr_ref = float(jnp.mean(x * x) * 2.0)
    np.testing.assert_allclose(float(pwr), pwr_ref, rtol=1e-5)

    # noise statistics: subtract the analytic normalized signal, check N(0, sigma)
    sigma = float(np.sqrt(1.0 / (2.0 * 10.0 ** (chan_param / 10.0))))
    tx = np.asarray(x, np.float32) / np.sqrt(pwr_ref)
    ref_c = tx[:, :, :H // 2, :] + 1j * tx[:, :, H // 2:, :]
    noise = np.asarray(out) - ref_c
    for comp in (noise.real, noise.imag):
        assert np.isfinite(comp).all()
        assert abs(comp.mean()) < 0.05
        assert 0.8 * sigma < comp.std() < 1.2 * sigma

    # tiling invariance: same seed -> same noise regardless of grid decomposition
    out_single, _, _ = channel_forward(x, chan_param, seed=0, tile_bc=16)
    np.testing.assert_allclose(np.asarray(out_single), np.asarray(out),
                               rtol=1e-5, atol=1e-6)

    print("KERNEL_OK")
</pallas_src>

<mosaic_0001>
module attributes {stable_mosaic.version = 11 : i64} {
  func.func @_awgn_channel_kernel(%arg0: i32, %arg1: memref<1xi32, #tpu.memory_space<smem>>, %arg2: memref<1xf32, #tpu.memory_space<smem>>, %arg3: memref<8x256xf32, #tpu.memory_space<vmem>>, %arg4: memref<8x256xf32, #tpu.memory_space<vmem>>) attributes {dimension_semantics = [#tpu.dimension_semantics<parallel>], iteration_bounds = array<i64: 2>, scalar_prefetch = 0 : i64, scratch_operands = 0 : i64, tpu.core_type = #tpu.core_type<tc>, window_params = [{transform_indices = @transform_0, window_bounds = array<i64: 1>}, {transform_indices = @transform_1, window_bounds = array<i64: 1>}, {transform_indices = @transform_2, window_bounds = array<i64: 8, 256>}, {transform_indices = @transform_3, window_bounds = array<i64: 8, 256>}]} {
    %c0 = arith.constant 0 : index
    %0 = memref.load %arg2[%c0] : memref<1xf32, #tpu.memory_space<smem>>
    %1 = tpu.iota {dimensions = array<i32: 0>} : vector<8x128xi32>
    %2 = tpu.iota {dimensions = array<i32: 1>} : vector<8x128xi32>
    %c8_i32 = arith.constant 8 : i32
    %3 = arith.muli %arg0, %c8_i32 : i32
    %4 = vector.broadcast %3 : i32 to vector<8x128xi32>
    %5 = arith.addi %4, %1 : vector<8x128xi32>
    %c128_i32 = arith.constant 128 : i32
    %6 = vector.broadcast %c128_i32 : i32 to vector<8x128xi32>
    %7 = arith.muli %5, %6 : vector<8x128xi32>
    %8 = arith.addi %7, %2 : vector<8x128xi32>
    %c-1640531535_i32 = arith.constant -1640531535 : i32
    %9 = vector.broadcast %c-1640531535_i32 : i32 to vector<8x128xi32>
    %10 = arith.muli %8, %9 : vector<8x128xi32>
    %c0_0 = arith.constant 0 : index
    %11 = memref.load %arg1[%c0_0] : memref<1xi32, #tpu.memory_space<smem>>
    %12 = vector.broadcast %11 : i32 to vector<8x128xi32>
    %13 = arith.addi %10, %12 : vector<8x128xi32>
    %c16_i32 = arith.constant 16 : i32
    %14 = vector.broadcast %c16_i32 : i32 to vector<8x128xi32>
    %15 = arith.shrui %13, %14 : vector<8x128xi32>
    %16 = arith.xori %13, %15 : vector<8x128xi32>
    %c-2048144789_i32 = arith.constant -2048144789 : i32
    %17 = vector.broadcast %c-2048144789_i32 : i32 to vector<8x128xi32>
    %18 = arith.muli %16, %17 : vector<8x128xi32>
    %c13_i32 = arith.constant 13 : i32
    %19 = vector.broadcast %c13_i32 : i32 to vector<8x128xi32>
    %20 = arith.shrui %18, %19 : vector<8x128xi32>
    %21 = arith.xori %18, %20 : vector<8x128xi32>
    %c-1028477387_i32 = arith.constant -1028477387 : i32
    %22 = vector.broadcast %c-1028477387_i32 : i32 to vector<8x128xi32>
    %23 = arith.muli %21, %22 : vector<8x128xi32>
    %c16_i32_1 = arith.constant 16 : i32
    %24 = vector.broadcast %c16_i32_1 : i32 to vector<8x128xi32>
    %25 = arith.shrui %23, %24 : vector<8x128xi32>
    %26 = arith.xori %23, %25 : vector<8x128xi32>
    %c16_i32_2 = arith.constant 16 : i32
    %27 = vector.broadcast %c16_i32_2 : i32 to vector<8x128xi32>
    %28 = arith.shrui %26, %27 : vector<8x128xi32>
    %c65535_i32 = arith.constant 65535 : i32
    %29 = vector.broadcast %c65535_i32 : i32 to vector<8x128xi32>
    %30 = arith.andi %26, %29 : vector<8x128xi32>
    %31 = arith.sitofp %28 : vector<8x128xi32> to vector<8x128xf32>
    %cst = arith.constant 5.000000e-01 : f32
    %32 = vector.broadcast %cst : f32 to vector<8x128xf32>
    %33 = arith.addf %31, %32 : vector<8x128xf32>
    %cst_3 = arith.constant 1.52587891E-5 : f32
    %34 = vector.broadcast %cst_3 : f32 to vector<8x128xf32>
    %35 = arith.mulf %33, %34 : vector<8x128xf32>
    %36 = arith.sitofp %30 : vector<8x128xi32> to vector<8x128xf32>
    %cst_4 = arith.constant 1.52587891E-5 : f32
    %37 = vector.broadcast %cst_4 : f32 to vector<8x128xf32>
    %38 = arith.mulf %36, %37 : vector<8x128xf32>
    %39 = math.log %35 : vector<8x128xf32>
    %cst_5 = arith.constant -2.000000e+00 : f32
    %40 = vector.broadcast %cst_5 : f32 to vector<8x128xf32>
    %41 = arith.mulf %40, %39 : vector<8x128xf32>
    %42 = math.sqrt %41 : vector<8x128xf32>
    %cst_6 = arith.constant 0.223606795 : f32
    %43 = vector.broadcast %cst_6 : f32 to vector<8x128xf32>
    %44 = arith.mulf %43, %42 : vector<8x128xf32>
    %cst_7 = arith.constant 6.28318548 : f32
    %45 = vector.broadcast %cst_7 : f32 to vector<8x128xf32>
    %46 = arith.mulf %45, %38 : vector<8x128xf32>
    %47 = math.cos %46 : vector<8x128xf32>
    %48 = arith.mulf %44, %47 : vector<8x128xf32>
    %49 = math.sin %46 : vector<8x128xf32>
    %50 = arith.mulf %44, %49 : vector<8x128xf32>
    %c0_8 = arith.constant 0 : index
    %c0_9 = arith.constant 0 : index
    %51 = vector.load %arg3[%c0_8, %c0_9] : memref<8x256xf32, #tpu.memory_space<vmem>>, vector<8x256xf32>
    %52 = vector.broadcast %0 : f32 to vector<8x256xf32>
    %53 = arith.mulf %51, %52 : vector<8x256xf32>
    %54 = vector.extract_strided_slice %53 {offsets = [0, 0], sizes = [8, 128], strides = [1, 1]} : vector<8x256xf32> to vector<8x128xf32>
    %55 = arith.addf %54, %48 : vector<8x128xf32>
    %c0_10 = arith.constant 0 : index
    %c0_11 = arith.constant 0 : index
    %56 = vector.load %arg4[%c0_10, %c0_11] : memref<8x256xf32, #tpu.memory_space<vmem>>, vector<8x128xf32>
    tpu.vector_store %arg4[%c0_10, %c0_11], %55 {strides = array<i32>} : memref<8x256xf32, #tpu.memory_space<vmem>>, vector<8x128xf32>,
    %57 = vector.extract_strided_slice %53 {offsets = [0, 128], sizes = [8, 128], strides = [1, 1]} : vector<8x256xf32> to vector<8x128xf32>
    %58 = arith.addf %57, %50 : vector<8x128xf32>
    %c0_12 = arith.constant 0 : index
    %c128 = arith.constant 128 : index
    %59 = vector.load %arg4[%c0_12, %c128] : memref<8x256xf32, #tpu.memory_space<vmem>>, vector<8x128xf32>
    tpu.vector_store %arg4[%c0_12, %c128], %58 {strides = array<i32>} : memref<8x256xf32, #tpu.memory_space<vmem>>, vector<8x128xf32>,
    return
  }
  func.func @transform_0(%arg0: i32) -> i32 {
    %c0_i32 = arith.constant 0 : i32
    %c0_i32_0 = arith.constant 0 : i32
    return %c0_i32 : i32
  }
  func.func @transform_1(%arg0: i32) -> i32 {
    %c0_i32 = arith.constant 0 : i32
    %c0_i32_0 = arith.constant 0 : i32
    return %c0_i32 : i32
  }
  func.func @transform_2(%arg0: i32) -> (i32, i32) {
    %c0_i32 = arith.constant 0 : i32
    %c0_i32_0 = arith.constant 0 : i32
    return %arg0, %c0_i32 : i32, i32
  }
  func.func @transform_3(%arg0: i32) -> (i32, i32) {
    %c0_i32 = arith.constant 0 : i32
    %c0_i32_0 = arith.constant 0 : i32
    return %arg0, %c0_i32 : i32, i32
  }
}

</mosaic_0001>

<bundles_post_ra>
// kernel: tpu_custom_call.1
= control target key start
LH: loop header
LB: loop body
LE: loop exit
PB: predicated region body
PF: predicated region fallthrough
CT: control target
= control target key end

     0   :  { %s927_s0 = inlined_call_operand.<no memory space> [shape: s32[1], index: 0, kind: input, shape index: {}]   ;;  %s928_s1 = inlined_call_operand.<no memory space> [shape: f32[1], index: 1, kind: input, shape index: {}]   ;;  %s929_s2 = inlined_call_operand.hbm [shape: f32[16,256], index: 2, kind: input, shape index: {}]   ;;  %s930_s3 = inlined_call_operand.hbm [shape: f32[16,256], index: 3, kind: output, shape index: {}]  }
   0x1   :  { %8 = sst [smem:[#allocation2]] %s927_s0 }
   0x2   :  { %9 = sst [smem:[#allocation3]] %s928_s1 }
   0x3   :  { %10 = vsyncpa [#allocation5], 0 }
   0x4   :  { %12 = vsyncpa [#allocation5 + $0x1], 0 }
   0x5   :  { %13 = vsyncpa [#allocation6], 0 }
   0x6   :  { %15 = vsyncpa [#allocation6 + $0x1], 0  ;;  %s750_s16 = smov 0   ;;  %s752_s17 = smov 0  }
   0x7   :  { %s754_s18 = smov 0   ;;  %s756_s19 = smov 0  }
   0x8 LB: > { %s771_s0 = sadd.s32 4294967295, %s714_s19   ;;  %s533_s1 = sadd.s32 4294967294, %s714_s19   ;;  %s714_s19 = sphi %s756_s19, %s947_s19   ;;  %s710_s18 = sphi %s754_s18, %s946_s18   ;;  %s706_s17 = sphi %s752_s17, %s945_s17   ;;  %s702_s16 = sphi %s750_s16, %s944_s16  }
   0x9   : > { %s775_s20 = sadd.s32 1, %s714_s19   ;;  %s70_s21 = sadd.s32 1, %s710_s18 }
   0xa   : > { %s67_s22 = ssub.s32 %s714_s19, %s775_s20  ;;  %p77_p0 = scmp.ne.s32.totalorder %s710_s18, %s706_s17 }
   0xb   : > { %p68_p1 = scmp.eq.s32.totalorder %s67_s22, 0  ;;  %p78_p2 = scmp.eq.s32.totalorder %s714_s19, 0 }
   0xc   : > { %p83_p3 = scmp.ne.s32.totalorder %s706_s17, %s702_s16  ;;  %p84_p4 = scmp.eq.s32.totalorder %s771_s0, 0 }
   0xd   : > { %s787_s23 = scalar_select %p68_p1, %s710_s18, %s70_s21  }
   0xe   : > { %p789_p5 = por %p78_p2, %p77_p0  ;;  %p793_p6 = por %p84_p4, %p83_p3 }
   0xf   : > { %p107_p7 = scmp.eq.s32.totalorder %s771_s0, 1  ;;  %p113_p8 = scmp.eq.s32.totalorder %s533_s1, 1 }
  0x10   : > { %s934_s25 = scalar_select %p793_p6, 1, 0 }
  0x11   : > { %p574_p10 = scmp.lt.s32.totalorder %s714_s19, 2  ;;  %p800_p11 = por %p107_p7, %p77_p0 }
  0x12   : > { %p804_p12 = por %p113_p8, %p83_p3  ;;  %s139_s28 = sand.u32 1, %s710_s18  }
  0x13   : > { %s935_s26 = scalar_select %p800_p11, 1, 0 }
  0x14   : > { %s936_s27 = scalar_select %p804_p12, 1, 0 }
  0x15   : > { %s556_s29 = sshll.u32 %s714_s19, 8  ;;  %s536_s30 = sshll.u32 %s139_s28, 4 }
  0x16   : > { %s813_s6 = scalar_lea.hbm %s929_s2, %s556_s29  ;;  %s143_s7 = scalar_lea.vmem [#allocation4], %s536_s30 }
  0x17   : > { %s151_s8 = sshll.u32 %s143_s7, 4  ;;  %p817_p13 = pnand %p574_p10, %p789_p5  ;;  %s821_s8 = int_to_ptr.vmem [resolvable:$true] %s151_s8 }
  0x18   : > { %s140_s10 = scalar_lea.sflag [#allocation5], %s139_s28  ;;  %s622_s11 = scalar_lea.hbm %s813_s6, 256 }
  0x19   : > { %p623_p2 = scmp.ne.s32.totalorder %s813_s6, %s622_s11  ;;  %p624_p3 = pneg %p817_p13 }
  0x1a   : > { %s627_s14 = scalar_lea.hbm %s929_s2, 512  ;;  %p628_p5 = scmp.lt.s32.totalorder %s813_s6, %s929_s2 }
  0x1b   : > { %p625_p4 = pnand %p624_p3, %p623_p2  ;;  %p629_p8 = scmp.lt.s32.totalorder %s627_s14, %s622_s11 }
  0x1d   : > { %p626_p7 = pneg %p625_p4  ;;  %p630_p10 = por %p629_p8, %p628_p5 }
  0x1f   : > { %p631_p9 = pnand %p630_p10, %p626_p7 }
  0x21   : > { %634 = shalt.err (!%p631_p9)
}
  0x22   : > { %s635_s21 = scalar_lea.vmem %s821_s8, 256  ;;  %s716_s22 = smov [#allocation4]  }
  0x23   : > { %p636_p0 = scmp.ne.s32.totalorder %s821_s8, %s635_s21  ;;  %s640_s24 = sshll.u32 %s716_s22, 4  ;;  %s641_s24 = int_to_ptr.vmem [resolvable:$false] %s640_s24 }
  0x24   : > { %s642_s28 = scalar_lea.vmem %s641_s24, 512  ;;  %p643_p4 = scmp.lt.s32.totalorder %s821_s8, %s641_s24 }
  0x25   : > { %p638_p1 = pnand %p636_p0, %p624_p3  ;;  %p644_p12 = scmp.lt.s32.totalorder %s642_s28, %s635_s21 }
  0x27   : > { %p639_p2 = pneg %p638_p1  ;;  %p645_p11 = por %p644_p12, %p643_p4 }
  0x29   : > { %p646_p6 = pnand %p645_p11, %p639_p2 }
  0x2b   : > { %649 = shalt.err (!%p646_p6)
}
  0x2c   : > { %569 = dma.hbm_to_vmem [thread:$0]  (!%p817_p13), %s813_s6, 256, %s821_s8, %s140_s10  }
  0x2d   : > { %p938_p9 = scmp.lt.s32.totalorder %s714_s19, 3  ;;  %p939_p7 = scmp.ge.s32.totalorder %s714_s19, 1 }
  0x2f   : > { %p157_p0 = pnand %p939_p7, %p938_p9 }
  0x30   : > { %s848_s29 = sand.u32 (!%p157_p0), 1, %s706_s17   ;;  %p940_p6 = scmp.ne.s32.totalorder (!%p157_p0), %s934_s25, 0 }
  0x31   : > { %160 = sbr.rel (%p157_p0) target bundleno = 193 (0xc1), region = 32  ;;  %s540_s30 = sshll.u32 (!%p157_p0), %s848_s29, 4 }
  0x32   : > { %s163_s4 = scalar_lea.sflag (!%p157_p0), [#allocation5], %s848_s29  ;;  %s854_s5 = scalar_lea.vmem (!%p157_p0), [#allocation4], %s540_s30 }
  0x36   : > { %693 = dma.done.wait (%p940_p6), %s163_s4, 256  }
  0x37   : > { %695 = vsyncadd (%p940_p6), %s163_s4, 4294967040  ;;  %v190_v0 = vlaneseq  ;;  %s542_s6 = sshll.u32 %s771_s0, 3  ;;  %s200_s7 = sld [smem:[#allocation2]]  ;;  %v717_v32 = vmov 683565275  }
  0x38   : > { %v195_v1 = vstv %s542_s6  ;;  %v718_v34 = vmov 2475754826   ;;  %v719_v36 = vmov 2131351028   ;;  %v720_v38 = vmov 2102212464  }
  0x39   : > { %v191_v2 = vshrl.u32 %v190_v0, 7  ;;  %v193_v3 = vand.u32 127, %v190_v0  ;;  %v721_v40 = vmov 920167782   ;;  %v722_v49 = vmov 1326507024  }
  0x3a   : > { %s189_s25 = sld [smem:[#allocation3]]  ;;  %s188_s8 = scalar_lea.vmem [#allocation7], %s540_s30 }
  0x3b   : > { %v196_v4 = vadd.s32 %v195_v1, %v191_v2  ;;  %s463_s9 = sshll.u32 %s188_s8, 4  ;;  %s557_s10 = sshll.u32 %s771_s0, 8  ;;  %s887_s9 = int_to_ptr.vmem [resolvable:$true] %s463_s9 }
  0x3c   : > { %s461_s13 = scalar_lea.hbm %s930_s3, %s557_s10  ;;  %s449_s14 = scalar_lea.sflag [#allocation6], %s848_s29 }
  0x3d   : > { %v197_v5 = vmul.u32 128, %v196_v4  ;;  %v201_v7 = vstv %s200_s7  ;;  %s650_s15 = scalar_lea.vmem %s887_s9, 256  ;;  %p941_p12 = scmp.ne.s32.totalorder %s935_s26, 0 }
  0x3e   : > { %p651_p11 = scmp.ne.s32.totalorder %s887_s9, %s650_s15  ;;  %s723_s0 = smov [#allocation7]  }
  0x3f   : > { %v198_v6 = vadd.s32 %v197_v5, %v193_v3  ;;  %s654_s1 = sshll.u32 %s723_s0, 4  ;;  %s655_s1 = int_to_ptr.vmem [resolvable:$false] %s654_s1 }
  0x40   : > { %p652_p13 = pnand %p651_p11, %p941_p12  ;;  %s656_s21 = scalar_lea.vmem %s655_s1, 512 }
  0x41   : > { %v199_v8 = vmul.u32 2654435761, %v198_v6  ;;  %p657_p3 = scmp.lt.s32.totalorder %s887_s9, %s655_s1  ;;  %p658_p5 = scmp.lt.s32.totalorder %s656_s21, %s650_s15 }
  0x42   : > { %p653_p1 = pneg %p652_p13 }
  0x43   : > { %v202_v9 = vadd.s32 %v201_v7, %v199_v8  ;;  %p659_p8 = por %p658_p5, %p657_p3 }
  0x45   : > { %v203_v10 = vshrl.u32 %v202_v9, 16  ;;  %p660_p10 = pnand %p659_p8, %p653_p1 }
  0x47   : > { %v204_v11 = vxor.u32 %v203_v10, %v202_v9 }
  0x49   : > { %v205_v12 = vmul.u32 2246822507, %v204_v11 }
  0x4b   : > { %v206_v13 = vshrl.u32 %v205_v12, 13 }
  0x4d   : > { %v207_v14 = vxor.u32 %v206_v13, %v205_v12 }
  0x4f   : > { %v208_v15 = vmul.u32 3266489909, %v207_v14 }
  0x51   : > { %v209_v16 = vshrl.u32 %v208_v15, 16 }
  0x53   : > { %v210_v17 = vxor.u32 %v209_v16, %v208_v15 }
  0x55   : > { %v212_v18 = vand.u32 65535, %v210_v17  ;;  %v211_v42 = vshrl.u32 %v210_v17, 16 }
  0x57   : > { %v216_v19 = vcvt.s32.f32 %v212_v18  ;;  %v213_v56 = vcvt.s32.f32 %v211_v42 }
  0x59   : > { %v217_v20 = vmul.f32 1.5258789e-05, %v216_v19  ;;  %v214_v8 = vadd.f32 0.5, %v213_v56 }
  0x5b   : > { %v861_v21 = vmul.f32 6.2831855, %v217_v20  ;;  %v215_v13 = vmul.f32 1.5258789e-05, %v214_v8 }
  0x5d   : > { %v233_v22 = vand.u32 2139095040, %v861_v21  ;;  %v230_v25 = vand.u32 2147483647, %v861_v21  ;;  %614 = vlog2.f32 %v215_v13  ;;  %vm232_vm7 = vcmp.lt.s32.totalorder %v861_v21, 0 }
  0x5f   : > { %v234_v23 = vshrl.u32 %v233_v22, 23  ;;  %v237_v28 = vand.u32 8388607, %v230_v25  ;;  %vm231_vm8 = vcmp.le.f32.partialorder %v230_v25, 0.7853982 }
  0x61   : > { %v543_v24 = vadd.s32 4294967169, %v234_v23  ;;  %v238_v43 = vor.u32 8388608, %v237_v28 }
  0x63   : > { %v240_v26 = vadd.s32 1, %v543_v24  ;;  %v278_v57 = vshll.u32 %v238_v43, 8 }
  0x65   : > { %vm241_vm0 = vcmp.gt.s32.totalorder %v240_v26, 0 }
  0x66   : > { %v242_v27 = vsel %vm241_vm0, %v240_v26, 0 }
  0x67   : > { %v244_v29 = vand.u32 31, %v242_v27  ;;  %v243_v30 = vshrl.u32 %v242_v27, 5 }
  0x69   : > { %v245_v31 = vsub.s32 32, %v244_v29  ;;  %v247_v33 = vshll.u32 %v717_v32, %v244_v29  ;;  %v250_v35 = vshll.u32 %v718_v34, %v244_v29  ;;  %v253_v37 = vshll.u32 %v719_v36, %v244_v29 }
  0x6a   : > { %v256_v39 = vshll.u32 %v720_v38, %v244_v29  ;;  %v259_v41 = vshll.u32 %v721_v40, %v244_v29  ;;  %vm262_vm1 = vcmp.lt.s32.totalorder %v243_v30, 1  ;;  %vm265_vm2 = vcmp.lt.s32.totalorder %v243_v30, 4  ;;  %v615_v24 = vpop.eup %614 }
  0x6b   : > { %v248_v44 = vshrl.u32 %v718_v34, %v245_v31  ;;  %v251_v45 = vshrl.u32 %v719_v36, %v245_v31  ;;  %v246_v46 = vshrl.u32 %v717_v32, %v245_v31  ;;  %v254_v47 = vshrl.u32 %v720_v38, %v245_v31 }
  0x6c   : > { %v257_v48 = vshrl.u32 %v721_v40, %v245_v31  ;;  %v260_v50 = vshrl.u32 %v722_v49, %v245_v31  ;;  %vm264_vm3 = vcmp.lt.s32.totalorder %v243_v30, 3  ;;  %vm263_vm4 = vcmp.lt.s32.totalorder %v243_v30, 2 }
  0x6d   : > { %v249_v51 = vor.u32 %v248_v44, %v247_v33  ;;  %v252_v52 = vor.u32 %v251_v45, %v250_v35  ;;  %v255_v53 = vor.u32 %v254_v47, %v253_v37  ;;  %v219_v27 = vmul.f32 0.6931472, %v615_v24 }
  0x6e   : > { %v258_v54 = vor.u32 %v257_v48, %v256_v39  ;;  %v261_v55 = vor.u32 %v260_v50, %v259_v41 }
  0x6f   : > { %v266_v58 = vsel %vm262_vm1, %v246_v46, %v249_v51  ;;  %v267_v59 = vsel %vm265_vm2, %v255_v53, 2102212464  ;;  %v270_v60 = vsel %vm262_vm1, %v249_v51, %v252_v52  ;;  %v274_v0 = vsel %vm262_vm1, %v252_v52, %v255_v53 }
  0x70   : > { %v271_v61 = vsel %vm265_vm2, %v258_v54, 920167782  ;;  %v268_v62 = vsel %vm264_vm3, %v252_v52, %v267_v59  ;;  %v275_v1 = vsel %vm265_vm2, %v261_v55, 1326507024  ;;  %v220_v33 = vmul.f32 -2.0, %v219_v27  ;;  %v439_v59 = vld [vmem:[%s854_s5] sm:$0xff] }
  0x71   : > { %v272_v63 = vsel %vm264_vm3, %v255_v53, %v271_v61  ;;  %v276_v3 = vsel %vm264_vm3, %v258_v54, %v275_v1  ;;  %v269_v4 = vsel %vm263_vm4, %v266_v58, %v268_v62  ;;  %v440_v61 = vld [vmem:[%s854_s5 + $0x8] sm:$0xff]  ;;  %vm322_vm1 = vweird.f32 %v861_v21 }
  0x72   : > { %v273_v2 = vsel %vm263_vm4, %v270_v60, %v272_v63  ;;  %v277_v5 = vsel %vm263_vm4, %v274_v0, %v276_v3  ;;  %v285_v11 = vmul.u32 %v278_v57, %v269_v4  ;;  %616 = vrsqrt.f32 %v220_v33 }
  0x73   : > { %v867_v6 = vmul.u32.u64.low %v278_v57, %v273_v2  ;;  %v868_v7 = vmul.u32.u64.high %v278_v57, %v273_v2, %v867_v6  ;;  %v870_v9 = vmul.u32.u64.low %v278_v57, %v277_v5  ;;  %v871_v10 = vmul.u32.u64.high %v278_v57, %v277_v5, %v870_v9 }
  0x74   : > { %vm223_vm9 = vcmp.eq.f32.partialorder %v220_v33, inf  ;;  %v226_v51 = vand.u32 2147483648, %v220_v33  ;;  %vm225_vm10 = vcmp.eq.f32.partialorder %v220_v33, 0.0  ;;  %v441_v60 = vstv %s189_s25 }
  0x75   : > { %v288_v12 = vadd.s32 1, %v868_v7  ;;  %vm287_vm5 = vc.u32 %v871_v10, %v867_v6  ;;  %v286_v28 = vadd.s32 %v867_v6, %v871_v10  ;;  %v442_v4 = vmul.f32 %v441_v60, %v439_v59 }
  0x76   : > { %v443_v6 = vmul.f32 %v441_v60, %v440_v61 }
  0x77   : > { %v289_v14 = vsel %vm287_vm5, %v288_v12, %v868_v7 }
  0x78   : > { %v290_v15 = vadd.s32 %v289_v14, %v285_v11 }
  0x7a   : > { %v291_v16 = vadd.s32 536870912, %v290_v15 }
  0x7c   : > { %v292_v17 = vshrl.u32 %v291_v16, 30 }
  0x7e   : > { %v293_v18 = vshll.u32 %v292_v17, 30  ;;  %v316_v42 = vsub.s32 4, %v292_v17 }
  0x7f   : > { %v617_v48 = vpop.eup %616 }
  0x80   : > { %v294_v19 = vsub.s32 %v290_v15, %v293_v18  ;;  %v317_v45 = vsel %vm232_vm7, %v316_v42, %v292_v17  ;;  %v222_v50 = vmul.f32 %v617_v48, %v220_v33 }
  0x81   : > { %v319_v47 = vsel %vm231_vm8, 0, %v317_v45 }
  0x82   : > { %v296_v20 = vsub.s32 0, %v294_v19  ;;  %v427_v49 = vadd.s32 3, %v319_v47  ;;  %v323_v52 = vand.u32 3, %v319_v47  ;;  %v224_v54 = vsel %vm223_vm9, %v220_v33, %v222_v50 }
  0x83   : > { %v227_v55 = vsel %vm225_vm10, %v226_v51, %v224_v54 }
  0x84   : > { %v544_v22 = vmin.u32 %v296_v20, %v294_v19  ;;  %v428_v53 = vand.u32 3, %v427_v49  ;;  %vm328_vm11 = vcmp.eq.s32.totalorder %v323_v52, 2  ;;  %vm325_vm13 = vcmp.eq.s32.totalorder %v323_v52, 0 }
  0x85   : > { %vm324_vm15 = vcmp.lt.s32.totalorder %v323_v52, 2  ;;  %v228_v62 = vmul.f32 0.2236068, %v227_v55 }
  0x86   : > { %v298_v23 = vclz %v544_v22  ;;  %vm433_vm12 = vcmp.eq.s32.totalorder %v428_v53, 2  ;;  %vm430_vm14 = vcmp.eq.s32.totalorder %v428_v53, 0  ;;  %vm429_vm0 = vcmp.lt.s32.totalorder %v428_v53, 2 }
  0x88   : > { %v545_v26 = vadd.s32 4294967294, %v298_v23 }
  0x8a   : > { %vm546_vm6 = vcmp.lt.s32.totalorder %v545_v26, 0 }
  0x8b   : > { %v301_v29 = vsel %vm546_vm6, 0, %v545_v26 }
  0x8c   : > { %v302_v30 = vsub.s32 32, %v301_v29  ;;  %v303_v31 = vshll.u32 %v294_v19, %v301_v29  ;;  %v306_v32 = vsub.s32 4294967266, %v301_v29 }
  0x8e   : > { %v304_v34 = vshrl.u32 %v286_v28, %v302_v30  ;;  %v307_v35 = vadd.s32 127, %v306_v32 }
  0x90   : > { %v305_v36 = vor.u32 %v304_v34, %v303_v31  ;;  %v308_v37 = vshll.u32 %v307_v35, 23 }
  0x92   : > { %v309_v38 = vor.u32 4788187, %v308_v37  ;;  %v312_v39 = vcvt.s32.f32 %v305_v36 }
  0x94   : > { %v310_v40 = vand.u32 2147483647, %v309_v38 }
  0x96   : > { %v313_v41 = vmul.f32 %v312_v39, %v310_v40 }
  0x98   : > { %v314_v43 = vxor.u32 2147483648, %v313_v41 }
  0x9a   : > { %v315_v44 = vsel %vm232_vm7, %v314_v43, %v313_v41 }
  0x9b   : > { %v318_v46 = vsel %vm231_vm8, %v861_v21, %v315_v44 }
  0x9c   : > { %618 = vcosq.f32 %v318_v46 }
  0x9d   : > { %620 = vsinq.f32 %v318_v46 }
  0xa9   : > { %v619_v25 = vpop.eup %618 }
  0xaa   : > { %v621_v56 = vpop.eup %620  ;;  %v329_v57 = vxor.u32 2147483648, %v619_v25 }
  0xab   : > { %v326_v58 = vxor.u32 2147483648, %v621_v56 }
  0xac   : > { %v330_v63 = vsel %vm328_vm11, %v329_v57, %v621_v56  ;;  %v435_v0 = vsel %vm433_vm12, %v329_v57, %v621_v56 }
  0xad   : > { %v327_v1 = vsel %vm325_vm13, %v619_v25, %v326_v58  ;;  %v432_v2 = vsel %vm430_vm14, %v619_v25, %v326_v58 }
  0xae   : > { %v331_v3 = vsel %vm324_vm15, %v327_v1, %v330_v63  ;;  %v436_v5 = vsel %vm429_vm0, %v432_v2, %v435_v0 }
  0xaf   : > { %v332_v7 = vsel %vm322_vm1, nan, %v331_v3  ;;  %v437_v8 = vsel %vm322_vm1, nan, %v436_v5 }
  0xb0   : > { %v333_v9 = vmul.f32 %v332_v7, %v228_v62  ;;  %v438_v10 = vmul.f32 %v437_v8, %v228_v62 }
  0xb2   : > { %v444_v11 = vadd.f32 %v442_v4, %v333_v9  ;;  %v446_v21 = vadd.f32 %v443_v6, %v438_v10 }
  0xb4   : > { %445 = vst [vmem:[%s188_s8] sm:$0xff] %v444_v11  ;;  %447 = vst [vmem:[%s188_s8 + $0x8] sm:$0xff] %v446_v21 }
  0xb5   : > { %663 = shalt.err (!%p660_p10)
}
  0xb6   : > { %s664_s22 = scalar_lea.hbm %s461_s13, 256  ;;  %s668_s29 = scalar_lea.hbm %s930_s3, 512 }
  0xb7   : > { %p665_p2 = scmp.ne.s32.totalorder %s461_s13, %s664_s22  ;;  %p669_p7 = scmp.lt.s32.totalorder %s461_s13, %s930_s3 }
  0xb8   : > { %p670_p0 = scmp.lt.s32.totalorder %s668_s29, %s664_s22 }
  0xb9   : > { %p666_p4 = pnand %p665_p2, %p941_p12 }
  0xba   : > { %p671_p6 = por %p670_p0, %p669_p7 }
  0xbb   : > { %p667_p9 = pneg %p666_p4 }
  0xbd   : > { %p672_p11 = pnand %p671_p6, %p667_p9 }
  0xbf   : > { %675 = shalt.err (!%p672_p11)
}
  0xc0   : > { %564 = dma.vmem_to_hbm [thread:$0]  (%p941_p12), %s887_s9, 256, %s461_s13, %s449_s14  }
  0xc1 PF: > { %s475_s5 = sand.u32 1, %s702_s16   ;;  %p942_p13 = scmp.ne.s32.totalorder %s936_s27, 0 }
  0xc2   : > { %p943_p1 = scmp.ge.s32.totalorder %s714_s19, 2  ;;  %s476_s6 = scalar_lea.sflag [#allocation6], %s475_s5 }
  0xc4   : > { %p571_p3 = pnand %p943_p1, %p942_p13 }
  0xc6   : > { %p572_p5 = pneg %p571_p3 }
  0xc8   : > { %697 = dma.done.wait (%p572_p5), %s476_s6, 256  }
  0xc9   : > { %699 = vsyncadd (%p572_p5), %s476_s6, 4294967040  ;;  %p18_p8 = scmp.ge.s32.totalorder %s775_s20, 4   ;;  %s944_s16 = smov %s706_s17 }
  0xca   : > { %s945_s17 = smov %s710_s18  ;;  %s946_s18 = smov %s787_s23 }
  0xcb   : > { %s947_s19 = smov %s775_s20  ;;  %20 = sbr.rel (!%p18_p8) target bundleno = 8 (0x8), region = 77 }
  0xd0   :  { %481 = vsyncpa [#allocation5], 1 }
  0xd1   :  { %483 = vsyncpa [#allocation5 + $0x1], 1 }
  0xd2   :  { %484 = vsyncpa [#allocation6], 1 }
  0xd3   :  { %486 = vsyncpa [#allocation6 + $0x1], 1 }

</bundles_post_ra>
